<compile_context>
chip_gen: v7x
topology: tpu7x:2x2x1
jax: 0.10.0
libtpu: 0.0.40
codegen_flags: <defaults>
</compile_context>

<pallas_src>
import math
from functools import partial

import jax
import jax.numpy as jnp
from jax.experimental import pallas as pl
from jax.experimental.pallas import tpu as pltpu


LANE = 128  # TPU vreg lane width; pad output channels to a multiple of this.


# ----------------------------------------------------------------------------
# Pallas kernel: fused dual-head linear.
#   x:  [bm, D]   (bf16)
#   wT: [D,  Cp]  (bf16, pre-transposed + zero-padded columns, resident)
#   b:  [1,  Cp]  (f32, zero-padded, resident)
#   o:  [bm, Cp]  (f32) = x @ wT + b     (f32 MXU accumulation)
# ----------------------------------------------------------------------------
def _fused_head_kernel(x_ref, wT_ref, b_ref, o_ref):
    y = jnp.dot(x_ref[...], wT_ref[...],
                preferred_element_type=jnp.float32)   # bf16 MXU, f32 acc
    o_ref[...] = y + b_ref[...]                       # lane-dense f32 store


def pallas_fused_heads(x_bf16, wT, b, *, block_b=512):
    """y = x @ wT + b with the fused, padded weight. Returns [B, Cp] f32."""
    B, D = x_bf16.shape
    D2, Cp = wT.shape
    assert D == D2 and Cp % LANE == 0

    if B < 16:
        # Tiny batch: single full-array block (legal: block dim == array dim).
        bm = B
    elif B <= block_b:
        # Split into >= 2 row tiles so v7x's second TensorCore has work.
        bm = ((pl.cdiv(B, 2) + 7) // 8) * 8
    else:
        bm = block_b

    grid = (pl.cdiv(B, bm),)  # ragged last block is masked by Pallas

    out = pl.pallas_call(
        _fused_head_kernel,
        out_shape=jax.ShapeDtypeStruct((B, Cp), jnp.float32),
        grid=grid,
        in_specs=[
            pl.BlockSpec((bm, D), lambda i: (i, 0)),   # row tile i (bf16)
            pl.BlockSpec((D, Cp), lambda i: (0, 0)),   # weight stays resident
            pl.BlockSpec((1, Cp), lambda i: (0, 0)),   # bias stays resident
        ],
        out_specs=pl.BlockSpec((bm, Cp), lambda i: (i, 0)),
        compiler_params=pltpu.CompilerParams(
            dimension_semantics=("parallel",),         # megacore / v7x 2-TC
        ),
    )(x_bf16, wT, b)
    return out


@jax.jit
def _fused_impl(x, wT, b):
    # Cast once here (fused under jit); kernel streams bf16 x.
    return pallas_fused_heads(x.astype(jnp.bfloat16), wT, b)


# ----------------------------------------------------------------------------
# MutiClassifier (parameters initialized deterministically, like __init__)
# ----------------------------------------------------------------------------
class MutiClassifier:
    def __init__(self, key, num_classes, feature_dim=512):
        self.num_classes = num_classes
        self.feature_dim = feature_dim
        k1, k2 = jax.random.split(key)

        # nn.init.xavier_uniform_(weight, gain=0.1), bias = 0
        def xavier_uniform(k, out_f, in_f, gain=0.1):
            bound = gain * math.sqrt(6.0 / (in_f + out_f))
            return jax.random.uniform(
                k, (out_f, in_f), minval=-bound, maxval=bound, dtype=jnp.float32
            )

        # Master f32 parameters (PyTorch [out, in] convention), kept for reference.
        self.w_cls = xavier_uniform(k1, num_classes, feature_dim)
        self.b_cls = jnp.zeros((num_classes,), jnp.float32)
        self.w_bcls = xavier_uniform(k2, num_classes * 2, feature_dim)
        self.b_bcls = jnp.zeros((num_classes * 2,), jnp.float32)

        # Fused, pre-transposed, lane-padded kernel parameters.
        self.c1 = num_classes
        self.c2 = num_classes * 2
        c_total = self.c1 + self.c2
        self.c_pad = ((c_total + LANE - 1) // LANE) * LANE

        w_cat = jnp.concatenate([self.w_cls, self.w_bcls], axis=0)    # [C1+C2, D]
        wT = w_cat.T                                                   # [D, C1+C2]
        wT = jnp.pad(wT, ((0, 0), (0, self.c_pad - c_total)))          # zero cols
        self.wT_pad = wT.astype(jnp.bfloat16)                          # [D, Cp] bf16

        b_cat = jnp.concatenate([self.b_cls, self.b_bcls], axis=0)     # [C1+C2]
        self.b_pad = jnp.pad(b_cat, (0, self.c_pad - c_total)).reshape(
            1, self.c_pad
        )                                                              # [1, Cp] f32

        # One-entry cache: forward() then b_forward() on the same x reuses
        # the single fused launch (JAX arrays are immutable, so `is` is safe).
        self._last_x = None
        self._last_y = None

    def _fused(self, x):
        # net(x) is identity here (features already extracted).
        if self._last_x is x and self._last_y is not None:
            return self._last_y
        y = _fused_impl(x, self.wT_pad, self.b_pad)   # single pallas_call launch
        self._last_x, self._last_y = x, y
        return y

    def forward(self, x):
        return self._fused(x)[:, : self.c1]

    def b_forward(self, x):
        return self._fused(x)[:, self.c1 : self.c1 + self.c2]

    def c_forward(self, x):
        y = self._fused(x)
        return y[:, : self.c1], y[:, self.c1 : self.c1 + self.c2]


# ----------------------------------------------------------------------------
if __name__ == "__main__":
    key = jax.random.PRNGKey(0)
    k_param, k_x, k_x2, k_x3 = jax.random.split(key, 4)

    feature_dim = 512
    num_classes = 8
    model = MutiClassifier(k_param, num_classes=num_classes, feature_dim=feature_dim)

    def reference(x):
        xb = x.astype(jnp.bfloat16)
        full = jnp.dot(xb, model.wT_pad, preferred_element_type=jnp.float32) + model.b_pad
        return full[:, :num_classes], full[:, num_classes : num_classes * 3]

    # --- tiny batch (single full-array block path) --------------------------
    B = 2
    x = jax.random.normal(k_x, (B, feature_dim), dtype=jnp.float32)

    y = model.forward(x)
    jax.block_until_ready(y)
    yb = model.b_forward(x)           # served from the one-entry cache
    jax.block_until_ready(yb)
    y1, y2 = model.c_forward(x)
    jax.block_until_ready((y1, y2))

    assert y.shape == (B, num_classes)
    assert yb.shape == (B, num_classes * 2)

    r1, r2 = reference(x)
    assert jnp.allclose(y, r1, atol=1e-4, rtol=1e-4)
    assert jnp.allclose(yb, r2, atol=1e-4, rtol=1e-4)
    assert jnp.allclose(y1, r1, atol=1e-4, rtol=1e-4)
    assert jnp.allclose(y2, r2, atol=1e-4, rtol=1e-4)

    # Loose sanity check vs full-f32 PyTorch-style math (bf16 weight error only).
    ref1_f32 = x @ model.w_cls.T + model.b_cls
    ref2_f32 = x @ model.w_bcls.T + model.b_bcls
    assert jnp.allclose(y, ref1_f32, atol=1e-2)
    assert jnp.allclose(yb, ref2_f32, atol=1e-2)

    # --- moderate batch (2-tile split for v7x, ragged last block) -----------
    Bm = 300
    xm = jax.random.normal(k_x2, (Bm, feature_dim), dtype=jnp.float32)
    y1m, y2m = model.c_forward(xm)
    jax.block_until_ready((y1m, y2m))
    r1m, r2m = reference(xm)
    assert y1m.shape == (Bm, num_classes) and y2m.shape == (Bm, num_classes * 2)
    assert jnp.allclose(y1m, r1m, atol=1e-4, rtol=1e-4)
    assert jnp.allclose(y2m, r2m, atol=1e-4, rtol=1e-4)

    # --- large batch (streaming path, bm=512, ragged final tile, no pad) ----
    Bl = 1030
    xl = jax.random.normal(k_x3, (Bl, feature_dim), dtype=jnp.float32)
    y1l, y2l = model.c_forward(xl)
    jax.block_until_ready((y1l, y2l))
    r1l, r2l = reference(xl)
    assert y1l.shape == (Bl, num_classes) and y2l.shape == (Bl, num_classes * 2)
    assert jnp.allclose(y1l, r1l, atol=1e-4, rtol=1e-4)
    assert jnp.allclose(y2l, r2l, atol=1e-4, rtol=1e-4)

    print("KERNEL_OK")
</pallas_src>

<mosaic_0001>
module attributes {stable_mosaic.version = 11 : i64} {
  func.func @_fused_head_kernel(%arg0: i32, %arg1: memref<2x512xbf16, #tpu.memory_space<vmem>>, %arg2: memref<512x128xbf16, #tpu.memory_space<vmem>>, %arg3: memref<1x128xf32, #tpu.memory_space<vmem>>, %arg4: memref<2x128xf32, #tpu.memory_space<vmem>>) attributes {dimension_semantics = [#tpu.dimension_semantics<parallel>], iteration_bounds = array<i64: 1>, scalar_prefetch = 0 : i64, scratch_operands = 0 : i64, tpu.core_type = #tpu.core_type<tc>, window_params = [{transform_indices = @transform_0, window_bounds = array<i64: 2, 512>}, {pipeline_mode = #tpu.pipeline_mode<synchronous>, transform_indices = @transform_1, window_bounds = array<i64: 512, 128>}, {pipeline_mode = #tpu.pipeline_mode<synchronous>, transform_indices = @transform_2, window_bounds = array<i64: 1, 128>}, {transform_indices = @transform_3, window_bounds = array<i64: 2, 128>}]} {
    %c0 = arith.constant 0 : index
    %c0_0 = arith.constant 0 : index
    %0 = vector.load %arg1[%c0, %c0_0] : memref<2x512xbf16, #tpu.memory_space<vmem>>, vector<2x512xbf16>
    %c0_1 = arith.constant 0 : index
    %c0_2 = arith.constant 0 : index
    %1 = vector.load %arg2[%c0_1, %c0_2] : memref<512x128xbf16, #tpu.memory_space<vmem>>, vector<512x128xbf16>
    %cst = arith.constant dense<0.000000e+00> : vector<2x128xf32>
    %2 = tpu.matmul %0, %1, %cst {dimension_numbers = #tpu.dot_dimension_numbers<[1], [0], [0], [1], [0, 0, 1, 1], [], []>} : vector<2x512xbf16>, vector<512x128xbf16>, vector<2x128xf32> -> vector<2x128xf32>
    %c0_3 = arith.constant 0 : index
    %c0_4 = arith.constant 0 : index
    %3 = vector.load %arg3[%c0_3, %c0_4] : memref<1x128xf32, #tpu.memory_space<vmem>>, vector<1x128xf32>
    %4 = vector.broadcast %3 : vector<1x128xf32> to vector<2x128xf32>
    %5 = arith.addf %2, %4 : vector<2x128xf32>
    %c0_5 = arith.constant 0 : index
    %c0_6 = arith.constant 0 : index
    %6 = vector.load %arg4[%c0_5, %c0_6] : memref<2x128xf32, #tpu.memory_space<vmem>>, vector<2x128xf32>
    tpu.vector_store %arg4[%c0_5, %c0_6], %5 {strides = array<i32>} : memref<2x128xf32, #tpu.memory_space<vmem>>, vector<2x128xf32>,
    return
  }
  func.func @transform_0(%arg0: i32) -> (i32, i32) {
    %c0_i32 = arith.constant 0 : i32
    %c0_i32_0 = arith.constant 0 : i32
    return %arg0, %c0_i32 : i32, i32
  }
  func.func @transform_1(%arg0: i32) -> (i32, i32) {
    %c0_i32 = arith.constant 0 : i32
    %c0_i32_0 = arith.constant 0 : i32
    %c0_i32_1 = arith.constant 0 : i32
    return %c0_i32, %c0_i32_0 : i32, i32
  }
  func.func @transform_2(%arg0: i32) -> (i32, i32) {
    %c0_i32 = arith.constant 0 : i32
    %c0_i32_0 = arith.constant 0 : i32
    %c0_i32_1 = arith.constant 0 : i32
    return %c0_i32, %c0_i32_0 : i32, i32
  }
  func.func @transform_3(%arg0: i32) -> (i32, i32) {
    %c0_i32 = arith.constant 0 : i32
    %c0_i32_0 = arith.constant 0 : i32
    return %arg0, %c0_i32 : i32, i32
  }
}

</mosaic_0001>

<bundles_post_ra>
// kernel: _fused_impl.1
= control target key start
LH: loop header
LB: loop body
LE: loop exit
PB: predicated region body
PF: predicated region fallthrough
CT: control target
= control target key end

     0   :  { %8 = vsyncpa [#allocation3], 0  ;;  %s637_s0 = inlined_call_operand.vmem [shape: bf16[2,512], index: 0, kind: input, shape index: {}]   ;;  %s638_s1 = inlined_call_operand.hbm [shape: bf16[512,128], index: 1, kind: input, shape index: {}]   ;;  %s639_s2 = inlined_call_operand.vmem [shape: f32[1,128], index: 2, kind: input, shape index: {}]   ;;  %s640_s3 = inlined_call_operand.hbm [shape: f32[2,128], index: 3, kind: output, shape index: {}]  }
   0x1   :  { %9 = vsyncpa [#allocation4], 0  ;;  %s582_s12 = smov [#allocation2]   ;;  %s534_s16 = scalar_lea.hbm %s638_s1, 4096 }
   0x2   :  { %s17_s13 = sshll.u32 %s582_s12, 4  ;;  %p535_p0 = scmp.ne.s32.totalorder %s638_s1, %s534_s16  ;;  %s18_s13 = int_to_ptr.vmem [resolvable:$true] %s17_s13 }
   0x3   :  { %p538_p1 = scmp.lt.u32.totalorder %s534_s16, %s638_s1 }
   0x5   :  { %p540_p2 = pnand %p538_p1, %p535_p0 }
   0x7   :  { %543 = shalt.err (!%p540_p2)
}
   0x8   :  { %s544_s21 = scalar_lea.vmem %s18_s13, 4096  ;;  %p549_p4 = scmp.lt.s32.totalorder %s18_s13, %s18_s13 }
   0x9   :  { %p545_p3 = scmp.ne.s32.totalorder %s18_s13, %s544_s21  ;;  %p550_p5 = scmp.lt.s32.totalorder %s544_s21, %s544_s21 }
   0xb   :  { %p551_p6 = por %p550_p5, %p549_p4 }
   0xd   :  { %p552_p7 = pnand %p551_p6, %p545_p3 }
   0xf   :  { %555 = shalt.err (!%p552_p7)
}
  0x10   :  { %s583_s22 = smov 64   ;;  %s584_s23 = smov 4  }
  0x11   :  { %23 = dma.hbm_to_vmem [thread:$0]  %s638_s1, 4096, %s18_s13, [#allocation3], %s583_s22, %s583_s22, %s584_s23  }
  0x12   :  { %578 = dma.done.wait [#allocation3], 4096  }
  0x13   :  { %579 = vsyncadd [#allocation3], 4294963200  ;;  %v502_v0 = vld [vmem:[#allocation2 + $0x40] sm:$0xff]   ;;  %v506_v4 = vld [vmem:[#allocation2 + $0x48] sm:$0xff]   ;;  %v585_v22 = vmov 1966171168   ;;  %v114_v24 = vlaneseq }
  0x14   :  { %v503_v1 = vld [vmem:[#allocation2 + $0xc0] sm:$0xff]   ;;  %453 = vmatprep.subr.bf16.mxu0 %v502_v0  ;;  %v507_v5 = vld [vmem:[#allocation2 + $0xc8] sm:$0xff]   ;;  %v510_v8 = vld [vmem:[#allocation2 + $0x50] sm:$0xff]   ;;  %v112_v23 = vunpack.c.l.s4 %v585_v22 }
  0x15   :  { %v504_v2 = vld [vmem:[#allocation2] sm:$0xff]   ;;  %475 = vmatprep.subr.bf16.mxu1 %v503_v1  ;;  %v508_v6 = vld [vmem:[#allocation2 + $0x8] sm:$0xff]   ;;  %v511_v9 = vld [vmem:[#allocation2 + $0xd0] sm:$0xff]   ;;  %v115_v30 = vshrl.u32 %v114_v24, 7 }
  0x16   :  { %v505_v3 = vld [vmem:[#allocation2 + $0x80] sm:$0xff]   ;;  %454 = vmatpush3.bf16.msra.mxu0 %v504_v2  ;;  %v509_v7 = vld [vmem:[#allocation2 + $0x88] sm:$0xff]   ;;  %v512_v10 = vld [vmem:[#allocation2 + $0x10] sm:$0xff]   ;;  %v113_v29 = vunpack.c.0.s8 %v112_v23 }
  0x17   :  { %476 = vmatpush3.bf16.msra.mxu1 %v505_v3  ;;  %455 = vmatprep.subr.bf16.mxu0 %v506_v4  ;;  %v513_v11 = vld [vmem:[#allocation2 + $0x90] sm:$0xff]   ;;  %v514_v12 = vld [vmem:[#allocation2 + $0x58] sm:$0xff]   ;;  %v518_v16 = vld [vmem:[#allocation2 + $0x60] sm:$0xff]  }
  0x18   :  { %477 = vmatprep.subr.bf16.mxu1 %v507_v5  ;;  %v515_v13 = vld [vmem:[#allocation2 + $0xd8] sm:$0xff]   ;;  %v519_v17 = vld [vmem:[#allocation2 + $0xe0] sm:$0xff]   ;;  %v522_v20 = vld [vmem:[#allocation2 + $0x68] sm:$0xff]   ;;  %v116_v35 = vsub.s32 %v113_v29, %v115_v30 }
  0x19   :  { %v516_v14 = vld [vmem:[#allocation2 + $0x18] sm:$0xff]   ;;  %v520_v18 = vld [vmem:[#allocation2 + $0x20] sm:$0xff]   ;;  %v523_v21 = vld [vmem:[#allocation2 + $0xe8] sm:$0xff]  }
  0x1a   :  { %456 = vmatpush3.bf16.msra.mxu0 %v508_v6  ;;  %v517_v15 = vld [vmem:[#allocation2 + $0x98] sm:$0xff]   ;;  %v521_v19 = vld [vmem:[#allocation2 + $0xa0] sm:$0xff]   ;;  %v524_v25 = vld [vmem:[#allocation2 + $0x28] sm:$0xff]  }
  0x1b   :  { %478 = vmatpush3.bf16.msra.mxu1 %v509_v7  ;;  %457 = vmatprep.subr.bf16.mxu0 %v510_v8  ;;  %v525_v26 = vld [vmem:[#allocation2 + $0xa8] sm:$0xff]   ;;  %v526_v27 = vld [vmem:[#allocation2 + $0x70] sm:$0xff]   ;;  %v530_v33 = vld [vmem:[#allocation2 + $0x78] sm:$0xff]  }
  0x1c   :  { %479 = vmatprep.subr.bf16.mxu1 %v511_v9  ;;  %v527_v28 = vld [vmem:[#allocation2 + $0xf0] sm:$0xff]   ;;  %v531_v34 = vld [vmem:[#allocation2 + $0xf8] sm:$0xff]  }
  0x1d   :  { %v528_v31 = vld [vmem:[#allocation2 + $0x30] sm:$0xff]   ;;  %v532_v36 = vld [vmem:[#allocation2 + $0x38] sm:$0xff]  }
  0x1e   :  { %458 = vmatpush3.bf16.msra.mxu0 %v512_v10  ;;  %v529_v32 = vld [vmem:[#allocation2 + $0xb0] sm:$0xff]   ;;  %v533_v37 = vld [vmem:[#allocation2 + $0xb8] sm:$0xff]  }
  0x1f   :  { %480 = vmatpush3.bf16.msra.mxu1 %v513_v11  ;;  %459 = vmatprep.subr.bf16.mxu0 %v514_v12  ;;  %v420_v38 = vld.sshfl [vmem:[%s637_s0] sm:$0x33 pattern:$0x75316420]  ;;  %s586_s0 = smov [#allocation5]  }
  0x20   :  { %481 = vmatprep.subr.bf16.mxu1 %v515_v13  ;;  %v110_v39 = vcombine.high %v420_v38, %v420_v38  ;;  %v117_v40 = vrot.slane %v420_v38, %v116_v35  ;;  %v419_v45 = vld [vmem:[%s639_s2] ss:$0 sm:$0xff]  ;;  %s410_s29 = sshll.u32 %s586_s0, 4  ;;  %s411_s29 = int_to_ptr.vmem [resolvable:$true] %s410_s29 }
  0x21   :  { %s556_s30 = scalar_lea.vmem %s411_s29, 32  ;;  %p561_p9 = scmp.lt.s32.totalorder %s411_s29, %s411_s29 }
  0x22   :  { %460 = vmatpush3.bf16.msra.mxu0 %v516_v14  ;;  %v124_v41 = vrot.slane %v110_v39, %v116_v35  ;;  %v125_v42 = vcombine.high %v117_v40, %v117_v40  ;;  %p557_p8 = scmp.ne.s32.totalorder %s411_s29, %s556_s30  ;;  %p562_p10 = scmp.lt.s32.totalorder %s556_s30, %s556_s30 }
  0x23   :  { %482 = vmatpush3.bf16.msra.mxu1 %v517_v15  ;;  %461 = vmatprep.subr.bf16.mxu0 %v518_v16 }
  0x24   :  { %483 = vmatprep.subr.bf16.mxu1 %v519_v17  ;;  %355 = vmatprep.mubr.bf16.mxu0 %v124_v41  ;;  %v126_v43 = vcombine.high %v124_v41, %v124_v41  ;;  %p563_p11 = por %p562_p10, %p561_p9 }
  0x26   :  { %462 = vmatpush3.bf16.msra.mxu0 %v520_v18  ;;  %395 = vmatprep.mubr.bf16.mxu1 %v126_v43  ;;  %p564_p12 = pnand %p563_p11, %p557_p8 }
  0x27   :  { %484 = vmatpush3.bf16.msra.mxu1 %v521_v19  ;;  %463 = vmatprep.subr.bf16.mxu0 %v522_v20 }
  0x28   :  { %485 = vmatprep.subr.bf16.mxu1 %v523_v21 }
  0x2a   :  { %464 = vmatpush3.bf16.msra.mxu0 %v524_v25 }
  0x2b   :  { %486 = vmatpush3.bf16.msra.mxu1 %v525_v26  ;;  %465 = vmatprep.subr.bf16.mxu0 %v526_v27 }
  0x2c   :  { %487 = vmatprep.subr.bf16.mxu1 %v527_v28 }
  0x2e   :  { %466 = vmatpush3.bf16.msra.mxu0 %v528_v31 }
  0x2f   :  { %488 = vmatpush3.bf16.msra.mxu1 %v529_v32  ;;  %467 = vmatprep.subr.bf16.mxu0 %v530_v33 }
  0x30   :  { %489 = vmatprep.subr.bf16.mxu1 %v531_v34 }
  0x32   :  { %468 = vmatpush3.bf16.msra.mxu0 %v532_v36 }
  0x33   :  { %490 = vmatpush3.bf16.msra.mxu1 %v533_v37 }
  0x35   :  { %356 = vmatmul.mubr.bf16.vlgmr.msra.gmra.mrb[0].mxu0 %v117_v40 }
  0x36   :  { %396 = vmatmul.mubr.bf16.vlgmr.msra.gmra.mrb[0].mxu1 %v125_v42 }
 0x108   :  { %v469_v44 = vpop.f32.mrb[0].mxu0 }
 0x109   :  { %v470_v46 = vpop.f32.mrb[1].mxu0  ;;  %v491_v47 = vpop.f32.mrb[0].mxu1 }
 0x10a   :  { %v471_v48 = vadd.f32 %v470_v46, %v469_v44  ;;  %v472_v49 = vpop.f32.mrb[2].mxu0  ;;  %v492_v50 = vpop.f32.mrb[1].mxu1 }
 0x10b   :  { %v473_v51 = vpop.f32.mrb[3].mxu0  ;;  %v493_v53 = vadd.f32 %v492_v50, %v491_v47  ;;  %v494_v54 = vpop.f32.mrb[2].mxu1 }
 0x10c   :  { %v358_v52 = vadd.f32 %v471_v48, %v419_v45  ;;  %v495_v55 = vpop.f32.mrb[3].mxu1 }
 0x10e   :  { %v398_v56 = vadd.f32 %v493_v53, %v358_v52 }
 0x110   :  { %403 = vst [vmem:[#allocation5] sm:$0x3] %v398_v56 }
 0x111   :  { %567 = shalt.err (!%p564_p12)
}
 0x112   :  { %s568_s5 = scalar_lea.hbm %s640_s3, 32 }
 0x113   :  { %p569_p13 = scmp.ne.s32.totalorder %s640_s3, %s568_s5  ;;  %p572_p0 = scmp.lt.u32.totalorder %s568_s5, %s640_s3 }
 0x115   :  { %p574_p1 = pnand %p572_p0, %p569_p13 }
 0x117   :  { %577 = shalt.err (!%p574_p1)
}
 0x118   :  { %413 = dma.vmem_to_hbm [thread:$0]  %s411_s29, 32, %s640_s3, [#allocation4]  }
 0x119   :  { %580 = dma.done.wait [#allocation4], 32  }
 0x11a   :  { %581 = vsyncadd [#allocation4], 4294967264 }
 0x11b   :  { %417 = vsyncpa [#allocation3], 1 }
 0x11c   :  { %418 = vsyncpa [#allocation4], 1 }

</bundles_post_ra>
